<compile_context>
chip_gen: v6e
topology: v6e:2x2x1
jax: 0.10.0
libtpu: 0.0.40
codegen_flags: <defaults>
</compile_context>

<pallas_src>
import jax
import jax.numpy as jnp
from jax import lax
from jax.experimental import pallas as pl
from jax.experimental.pallas import tpu as pltpu


def _round_up(x, m):
    return (x + m - 1) // m * m


def pwd_kernel(p_ref, pn_ref, ct_ref, csq_ref, dmin_ref, lbl_ref):
    # p_ref  : (TN, D)          pn_ref : (1, 1, TN)   lane-dense row norms
    # ct_ref : (D, Kp)          csq_ref: (1, Kp)
    # dmin_ref / lbl_ref : (1, 1, TN)  lane-dense outputs
    pc = jnp.dot(p_ref[...], ct_ref[...], preferred_element_type=jnp.float32)  # (TN, Kp)
    s = csq_ref[...] - 2.0 * pc                                                 # (TN, Kp), pn deferred
    s_t = jnp.transpose(s)                                                      # (Kp, TN) via XLU (free here)

    min_s = jnp.min(s_t, axis=0, keepdims=True)                                 # (1, TN)

    # First-occurrence argmin over the centroid (sublane) axis.
    kp = s_t.shape[0]
    row_idx = lax.broadcasted_iota(jnp.int32, s_t.shape, 0)                     # (Kp, TN)
    masked = jnp.where(s_t == min_s, row_idx, jnp.int32(kp))
    labels = jnp.min(masked, axis=0, keepdims=True)                             # (1, TN)

    dmin_ref[0] = (min_s + pn_ref[0]).astype(dmin_ref.dtype)
    lbl_ref[0] = labels


def pwd(p, pn, c, c_sq, *, tile_n=2048, use_bf16=False):
    """Pallas implementation of PWD.forward(p, pn, c, c_sq)."""
    N, D = p.shape
    K, Dc = c.shape
    assert D == Dc
    pn = jnp.reshape(pn, (N,)).astype(jnp.float32)
    c_sq = jnp.reshape(c_sq, (K,)).astype(jnp.float32)

    # ---- pad K to a lane multiple of 128; padded centroids can never win. ----
    k_pad = _round_up(K, 128)
    if k_pad != K:
        c = jnp.concatenate([c, jnp.zeros((k_pad - K, D), c.dtype)], axis=0)
        c_sq = jnp.concatenate(
            [c_sq, jnp.full((k_pad - K,), jnp.inf, jnp.float32)], axis=0)

    # ---- choose the row tile under a conservative VMEM budget (v7x: 64 MiB). ----
    in_esize = 2 if use_bf16 else 4

    def est_bytes(t):
        resident = 2 * (D * k_pad * in_esize + k_pad * 4)            # c_t + c_sq (dbl-buffered)
        streamed = 2 * (t * D * in_esize + t * 4) + 2 * 2 * t * 4    # p + pn + both outputs
        interm = 5 * t * k_pad * 4                                   # pc, s, s_t, iota, masked
        return resident + streamed + interm

    budget = 40 * 2**20
    tile = 128
    for t in (2048, 1024, 512, 256, 128):
        if t <= tile_n and t <= _round_up(N, 128) and est_bytes(t) <= budget:
            tile = t
            break
    # TODO(synk): for very large K, add a second "arbitrary" grid axis streaming
    # (D, tile_k) centroid blocks with running min/label scratch instead of only
    # shrinking tile_n.

    # ---- pad N up to a multiple of the tile (padded rows are sliced off). ----
    n_pad = _round_up(N, tile)
    if n_pad != N:
        p = jnp.concatenate([p, jnp.zeros((n_pad - N, D), p.dtype)], axis=0)
        pn = jnp.concatenate([pn, jnp.zeros((n_pad - N,), jnp.float32)], axis=0)
    g = n_pad // tile

    in_dtype = jnp.bfloat16 if use_bf16 else jnp.float32
    # NOTE: if centroids are static across many calls (k-means inner loop), hoist
    # c_t / csq2 construction out of the hot path.
    c_t = c.T.astype(in_dtype)                 # (D, Kp), resident MXU operand
    p_in = p.astype(in_dtype)                  # (n_pad, D)
    pn3 = pn.reshape(g, 1, tile)               # lane-dense row norms
    csq2 = c_sq.reshape(1, k_pad)

    vmem_limit = int(min(64 * 2**20, max(32 * 2**20, est_bytes(tile) + 8 * 2**20)))

    out_shapes = (
        jax.ShapeDtypeStruct((g, 1, tile), jnp.float32),
        jax.ShapeDtypeStruct((g, 1, tile), jnp.int32),
    )

    dmin, labels = pl.pallas_call(
        pwd_kernel,
        out_shape=out_shapes,
        grid_spec=pltpu.PrefetchScalarGridSpec(
            num_scalar_prefetch=0,
            grid=(g,),
            in_specs=[
                pl.BlockSpec((tile, D), lambda i: (i, 0)),        # p tile
                pl.BlockSpec((1, 1, tile), lambda i: (i, 0, 0)),  # pn (lane-dense)
                pl.BlockSpec((D, k_pad), lambda i: (0, 0)),       # c_t (resident)
                pl.BlockSpec((1, k_pad), lambda i: (0, 0)),       # c_sq (resident)
            ],
            out_specs=[
                pl.BlockSpec((1, 1, tile), lambda i: (i, 0, 0)),  # min_dists
                pl.BlockSpec((1, 1, tile), lambda i: (i, 0, 0)),  # min_labels
            ],
        ),
        compiler_params=pltpu.CompilerParams(
            dimension_semantics=("parallel",),
            vmem_limit_bytes=vmem_limit,
        ),
    )(p_in, pn3, c_t, csq2)

    return dmin.reshape(-1)[:N], labels.reshape(-1)[:N]


def pwd_reference(p, pn, c, c_sq):
    """Pure-JAX reference mirroring the torch code."""
    dist = pn.reshape(-1, 1) + c_sq.reshape(1, -1) - 2.0 * (p @ c.T)
    return jnp.min(dist, axis=1), jnp.argmin(dist, axis=1).astype(jnp.int32)


if __name__ == "__main__":
    key = jax.random.PRNGKey(0)
    k_p, k_c = jax.random.split(key)

    # Small, deliberately non-128-aligned shapes to exercise N/K padding paths.
    N, D, K = 384, 32, 48
    p = jax.random.normal(k_p, (N, D), dtype=jnp.float32)
    c = jax.random.normal(k_c, (K, D), dtype=jnp.float32)
    pn = jnp.sum(p * p, axis=1, keepdims=True)          # [N, 1]
    c_sq = jnp.sum(c * c, axis=1)[None, :]               # [1, K]

    min_d, labels = pwd(p, pn, c, c_sq)
    jax.block_until_ready((min_d, labels))

    ref_d, ref_l = pwd_reference(p, pn, c, c_sq)
    ref_dist = pn + c_sq - 2.0 * (p @ c.T)

    # Min distances match the torch formula.
    assert jnp.allclose(min_d, ref_d, rtol=1e-4, atol=1e-4)
    # Each chosen label indexes a nearest centroid (robust to fp near-ties).
    picked = ref_dist[jnp.arange(N), labels]
    assert jnp.allclose(picked, ref_d, rtol=1e-4, atol=1e-4)
    # And labels agree with the reference argmin (allow only fp-tie slack).
    assert jnp.mean((labels == ref_l).astype(jnp.float32)) >= 0.99

    print("KERNEL_OK")
</pallas_src>

<mosaic_0001>
module attributes {stable_mosaic.version = 11 : i64} {
  func.func @pwd_kernel(%arg0: i32, %arg1: memref<256x32xf32, #tpu.memory_space<vmem>>, %arg2: memref<1x1x256xf32, #tpu.memory_space<vmem>>, %arg3: memref<32x128xf32, #tpu.memory_space<vmem>>, %arg4: memref<1x128xf32, #tpu.memory_space<vmem>>, %arg5: memref<1x1x256xf32, #tpu.memory_space<vmem>>, %arg6: memref<1x1x256xi32, #tpu.memory_space<vmem>>) attributes {dimension_semantics = [#tpu.dimension_semantics<parallel>], iteration_bounds = array<i64: 2>, scalar_prefetch = 0 : i64, scratch_operands = 0 : i64, tpu.core_type = #tpu.core_type<tc>, window_params = [{transform_indices = @transform_0, window_bounds = array<i64: 256, 32>}, {transform_indices = @transform_1, window_bounds = array<i64: 1, 1, 256>}, {pipeline_mode = #tpu.pipeline_mode<synchronous>, transform_indices = @transform_2, window_bounds = array<i64: 32, 128>}, {pipeline_mode = #tpu.pipeline_mode<synchronous>, transform_indices = @transform_3, window_bounds = array<i64: 1, 128>}, {transform_indices = @transform_4, window_bounds = array<i64: 1, 1, 256>}, {transform_indices = @transform_5, window_bounds = array<i64: 1, 1, 256>}]} {
    %c0 = arith.constant 0 : index
    %c0_0 = arith.constant 0 : index
    %0 = vector.load %arg1[%c0, %c0_0] : memref<256x32xf32, #tpu.memory_space<vmem>>, vector<256x32xf32>
    %c0_1 = arith.constant 0 : index
    %c0_2 = arith.constant 0 : index
    %1 = vector.load %arg3[%c0_1, %c0_2] : memref<32x128xf32, #tpu.memory_space<vmem>>, vector<32x128xf32>
    %cst = arith.constant dense<0.000000e+00> : vector<256x128xf32>
    %2 = tpu.matmul %0, %1, %cst {dimension_numbers = #tpu.dot_dimension_numbers<[1], [0], [0], [1], [0, 0, 1, 1], [], []>} : vector<256x32xf32>, vector<32x128xf32>, vector<256x128xf32> -> vector<256x128xf32>
    %c0_3 = arith.constant 0 : index
    %c0_4 = arith.constant 0 : index
    %3 = vector.load %arg4[%c0_3, %c0_4] : memref<1x128xf32, #tpu.memory_space<vmem>>, vector<1x128xf32>
    %cst_5 = arith.constant 2.000000e+00 : f32
    %4 = vector.broadcast %cst_5 : f32 to vector<256x128xf32>
    %5 = arith.mulf %4, %2 : vector<256x128xf32>
    %6 = vector.broadcast %3 : vector<1x128xf32> to vector<256x128xf32>
    %7 = arith.subf %6, %5 : vector<256x128xf32>
    %8 = tpu.transpose %7, [1, 0] : vector<256x128xf32> -> vector<128x256xf32>
    %cst_6 = arith.constant dense<0x7F800000> : vector<256xf32>
    %9 = vector.multi_reduction <minimumf>, %8, %cst_6 [0] : vector<128x256xf32> to vector<256xf32>
    %10 = vector.shape_cast %9 : vector<256xf32> to vector<1x256xf32>
    %11 = tpu.iota {dimensions = array<i32: 0>} : vector<128x256xi32>
    %12 = vector.broadcast %10 : vector<1x256xf32> to vector<128x256xf32>
    %13 = arith.cmpf oeq, %8, %12 : vector<128x256xf32>
    %c128_i32 = arith.constant 128 : i32
    %14 = vector.broadcast %c128_i32 : i32 to vector<128x256xi32>
    %15 = arith.select %13, %11, %14 : vector<128x256xi1>, vector<128x256xi32>
    %cst_7 = arith.constant dense<2147483647> : vector<256xi32>
    %16 = vector.multi_reduction <minsi>, %15, %cst_7 [0] : vector<128x256xi32> to vector<256xi32>
    %17 = vector.shape_cast %16 : vector<256xi32> to vector<1x256xi32>
    %c0_8 = arith.constant 0 : index
    %c0_9 = arith.constant 0 : index
    %c0_10 = arith.constant 0 : index
    %18 = vector.load %arg2[%c0_8, %c0_9, %c0_10] : memref<1x1x256xf32, #tpu.memory_space<vmem>>, vector<1x1x256xf32>
    %19 = vector.shape_cast %18 : vector<1x1x256xf32> to vector<1x256xf32>
    %20 = arith.addf %10, %19 : vector<1x256xf32>
    %c0_11 = arith.constant 0 : index
    %c0_12 = arith.constant 0 : index
    %c0_13 = arith.constant 0 : index
    %21 = vector.load %arg5[%c0_11, %c0_12, %c0_13] : memref<1x1x256xf32, #tpu.memory_space<vmem>>, vector<1x1x256xf32>
    %22 = vector.shape_cast %21 : vector<1x1x256xf32> to vector<1x256xf32>
    %23 = vector.shape_cast %20 : vector<1x256xf32> to vector<1x1x256xf32>
    tpu.vector_store %arg5[%c0_11, %c0_12, %c0_13], %23 {strides = array<i32>} : memref<1x1x256xf32, #tpu.memory_space<vmem>>, vector<1x1x256xf32>,
    %c0_14 = arith.constant 0 : index
    %c0_15 = arith.constant 0 : index
    %c0_16 = arith.constant 0 : index
    %24 = vector.load %arg6[%c0_14, %c0_15, %c0_16] : memref<1x1x256xi32, #tpu.memory_space<vmem>>, vector<1x1x256xi32>
    %25 = vector.shape_cast %24 : vector<1x1x256xi32> to vector<1x256xi32>
    %26 = vector.shape_cast %17 : vector<1x256xi32> to vector<1x1x256xi32>
    tpu.vector_store %arg6[%c0_14, %c0_15, %c0_16], %26 {strides = array<i32>} : memref<1x1x256xi32, #tpu.memory_space<vmem>>, vector<1x1x256xi32>,
    return
  }
  func.func @transform_0(%arg0: i32) -> (i32, i32) {
    %c0_i32 = arith.constant 0 : i32
    %c0_i32_0 = arith.constant 0 : i32
    return %arg0, %c0_i32 : i32, i32
  }
  func.func @transform_1(%arg0: i32) -> (i32, i32, i32) {
    %c0_i32 = arith.constant 0 : i32
    %c0_i32_0 = arith.constant 0 : i32
    %c0_i32_1 = arith.constant 0 : i32
    return %arg0, %c0_i32, %c0_i32_0 : i32, i32, i32
  }
  func.func @transform_2(%arg0: i32) -> (i32, i32) {
    %c0_i32 = arith.constant 0 : i32
    %c0_i32_0 = arith.constant 0 : i32
    %c0_i32_1 = arith.constant 0 : i32
    return %c0_i32, %c0_i32_0 : i32, i32
  }
  func.func @transform_3(%arg0: i32) -> (i32, i32) {
    %c0_i32 = arith.constant 0 : i32
    %c0_i32_0 = arith.constant 0 : i32
    %c0_i32_1 = arith.constant 0 : i32
    return %c0_i32, %c0_i32_0 : i32, i32
  }
  func.func @transform_4(%arg0: i32) -> (i32, i32, i32) {
    %c0_i32 = arith.constant 0 : i32
    %c0_i32_0 = arith.constant 0 : i32
    %c0_i32_1 = arith.constant 0 : i32
    return %arg0, %c0_i32, %c0_i32_0 : i32, i32, i32
  }
  func.func @transform_5(%arg0: i32) -> (i32, i32, i32) {
    %c0_i32 = arith.constant 0 : i32
    %c0_i32_0 = arith.constant 0 : i32
    %c0_i32_1 = arith.constant 0 : i32
    return %arg0, %c0_i32, %c0_i32_0 : i32, i32, i32
  }
}

</mosaic_0001>

<bundles_post_ra>
// kernel: tpu_custom_call.1
= control target key start
LH: loop header
LB: loop body
LE: loop exit
PB: predicated region body
PF: predicated region fallthrough
CT: control target
= control target key end

     0   :  { %11 = vsyncpa [#allocation3], 0  ;;  %s2065_s0 = inlined_call_operand.vmem [shape: f32[512,32], index: 0, kind: input, shape index: {}]   ;;  %s2066_s1 = inlined_call_operand.vmem [shape: f32[2,1,256], index: 1, kind: input, shape index: {}]   ;;  %s2067_s2 = inlined_call_operand.vmem [shape: f32[32,128], index: 2, kind: input, shape index: {}]   ;;  %s2068_s3 = inlined_call_operand.vmem [shape: f32[1,128], index: 3, kind: input, shape index: {}]   ;;  %s2069_s4 = inlined_call_operand.hbm [shape: f32[2,1,256], index: 4, kind: output, shape index: {0}]   ;;  %s2070_s5 = inlined_call_operand.hbm [shape: s32[2,1,256], index: 5, kind: output, shape index: {1}]  }
   0x1   :  { %13 = vsyncpa [#allocation3 + $0x1], 0 }
   0x2   :  { %14 = vsyncpa [#allocation5], 0 }
   0x3   :  { %16 = vsyncpa [#allocation5 + $0x1], 0  ;;  %s1459_s18 = smov 0   ;;  %s1461_s19 = smov 0  }
   0x4   :  { %s1463_s20 = smov 0   ;;  %s1465_s21 = smov 0  }
   0x5 LB: > { %s1480_s22 = sadd.s32 4294967295, %s1424_s21   ;;  %s1137_s23 = sadd.s32 4294967294, %s1424_s21   ;;  %s1424_s21 = sphi %s1465_s21, %s2078_s21   ;;  %s1420_s20 = sphi %s1463_s20, %s2077_s20   ;;  %s1416_s19 = sphi %s1461_s19, %s2076_s19   ;;  %s1412_s18 = sphi %s1459_s18, %s2075_s18  }
   0x6   : > { %s1484_s24 = sadd.s32 1, %s1424_s21   ;;  %s123_s25 = sadd.s32 1, %s1420_s20 }
   0x7   : > { %s120_s26 = ssub.s32 %s1424_s21, %s1484_s24  ;;  %p133_p0 = scmp.ne.s32.totalorder %s1420_s20, %s1416_s19 }
   0x8   : > { %p121_p1 = scmp.eq.s32.totalorder %s120_s26, 0  ;;  %p134_p2 = scmp.eq.s32.totalorder %s1480_s22, 1 }
   0x9   : > { %p139_p3 = scmp.ne.s32.totalorder %s1416_s19, %s1412_s18  ;;  %p140_p4 = scmp.eq.s32.totalorder %s1137_s23, 1 }
   0xa   : > { %s1495_s27 = scalar_select %p121_p1, %s1420_s20, %s123_s25  }
   0xb   : > { %p1497_p5 = por %p134_p2, %p133_p0  ;;  %p1501_p6 = por %p140_p4, %p139_p3 }
   0xc   : > { %p1140_p7 = scmp.ge.s32.totalorder %s1424_s21, 1  ;;  %p206_p8 = scmp.lt.s32.totalorder %s1424_s21, 3 }
   0xe   : > { %p207_p9 = pnand %p1140_p7, %p206_p8 }
   0xf   : > { %s1514_s9 = sshll.u32 (!%p207_p9), %s1480_s22, 5  ;;  %p249_p11 = scmp.lt.s32.totalorder (!%p207_p9), %s1480_s22, 1 }
  0x10   : > { %210 = sbr.rel (%p207_p9) target bundleno = 510 (0x1fe), region = 36  ;;  %p244_p10 = scmp.lt.s32.totalorder (!%p207_p9), %s1514_s9, 63 }
  0x11   : > { %s1917_s8 = sand.u32 (!%p207_p9), 1, %s1416_s19  }
  0x12   : > { %s1141_s10 = sshll.u32 (!%p207_p9), %s1917_s8, 1  ;;  %s1001_s16 = scalar_lea.sflag (!%p207_p9), [#allocation3], %s1917_s8 }
  0x13   : > { %s235_s11 = scalar_lea.vmem (!%p207_p9), [#allocation2], %s1141_s10 }
  0x15   : > { %v288_v0 = vld [vmem:[%s2067_s2 + $0x18] sm:$0xff]  ;;  %v287_v1 = vld [vmem:[%s2067_s2 + $0x10] sm:$0xff]  ;;  %v286_v2 = vld [vmem:[%s2067_s2 + $0x8] sm:$0xff]  ;;  %s245_s12 = scalar_select %p244_p10, %s1514_s9, 63  ;;  %vm289_vm0 = vcmask 261120  }
  0x16   : > { %1225 = vmatprep.subr.mxu0 %v288_v0  ;;  %1281 = vmatprep.subr.mxu1 %v288_v0  ;;  %v285_v3 = vld [vmem:[%s2067_s2] sm:$0xff]  ;;  %s2080_s22 = smov (!%p249_p11, %s1480_s22), 1 }
  0x17   : > { %1226 = vmatpush3.msra.mxu0 %v288_v0  ;;  %1285 = vmatpush3.msra.mxu1 %v288_v0  ;;  %s1144_s15 = sshll.u32 %s245_s12, 3  ;;  %v1596_v44 = vld [vmem:[%s2068_s3] ss:$0 sm:$0xff]  ;;  %s1145_s30 = sshll.u32 %s2080_s22, 1 }
  0x18   : > { %1227 = vmatprep.subr.mxu0 %v287_v1  ;;  %1282 = vmatprep.subr.mxu1 %v287_v1  ;;  %s1527_s23 = scalar_lea.vmem %s2065_s0, %s1144_s15  ;;  %s252_s7 = scalar_lea.vmem %s2066_s1, %s1145_s30 }
  0x19   : > { %1228 = vmatpush3.msra.mxu0 %v287_v1  ;;  %1286 = vmatpush3.msra.mxu1 %v287_v1  ;;  %v253_v4 = vld [vmem:[%s1527_s23] sm:$0xff]  ;;  %v254_v6 = vld [vmem:[%s1527_s23 + $0x8] sm:$0xff]  ;;  %v255_v8 = vld [vmem:[%s1527_s23 + $0x10] sm:$0xff]  ;;  %s1020_s12 = sshll.u32 %s235_s11, 4  ;;  %s1980_s15 = scalar_lea.hbm %s2069_s4, %s1514_s9  ;;  %s1982_s12 = int_to_ptr.vmem [resolvable:$true] %s1020_s12 }
  0x1a   : > { %1229 = vmatprep.subr.mxu0 %v286_v2  ;;  %1283 = vmatprep.subr.mxu1 %v286_v2  ;;  %v269_v5 = vld [vmem:[%s1527_s23 + $0x80] sm:$0xff]  ;;  %v270_v7 = vld [vmem:[%s1527_s23 + $0x88] sm:$0xff]  ;;  %v271_v9 = vld [vmem:[%s1527_s23 + $0x90] sm:$0xff]  ;;  %s1334_s17 = scalar_lea.vmem %s1982_s12, 32 }
  0x1b   : > { %1230 = vmatpush3.msra.mxu0 %v286_v2  ;;  %1287 = vmatpush3.msra.mxu1 %v286_v2  ;;  %v256_v10 = vld [vmem:[%s1527_s23 + $0x18] sm:$0xff]  ;;  %v257_v12 = vld [vmem:[%s1527_s23 + $0x20] sm:$0xff]  ;;  %v258_v14 = vld [vmem:[%s1527_s23 + $0x28] sm:$0xff]  ;;  %p1335_p12 = scmp.ne.s32.totalorder %s1982_s12, %s1334_s17 }
  0x1c   : > { %1231 = vmatprep.subr.mxu0 %v285_v3  ;;  %1284 = vmatprep.subr.mxu1 %v285_v3  ;;  %v272_v11 = vld [vmem:[%s1527_s23 + $0x98] sm:$0xff]  ;;  %v273_v13 = vld [vmem:[%s1527_s23 + $0xa0] sm:$0xff]  ;;  %v274_v15 = vld [vmem:[%s1527_s23 + $0xa8] sm:$0xff] }
  0x1d   : > { %1232 = vmatpush3.msra.mxu0 %v285_v3  ;;  %1288 = vmatpush3.msra.mxu1 %v285_v3  ;;  %v259_v16 = vld [vmem:[%s1527_s23 + $0x30] sm:$0xff]  ;;  %v260_v18 = vld [vmem:[%s1527_s23 + $0x38] sm:$0xff]  ;;  %v261_v20 = vld [vmem:[%s1527_s23 + $0x40] sm:$0xff]  ;;  %p1336_p13 = pnand %p1335_p12, %p1497_p5 }
  0x1e   : > { %1233 = vmatprep.mubr.msk.f32.mxu0 %vm289_vm0, %v253_v4  ;;  %1257 = vmatprep.mubr.msk.f32.mxu1 %vm289_vm0, %v269_v5  ;;  %v275_v17 = vld [vmem:[%s1527_s23 + $0xb0] sm:$0xff]  ;;  %v276_v19 = vld [vmem:[%s1527_s23 + $0xb8] sm:$0xff]  ;;  %v277_v21 = vld [vmem:[%s1527_s23 + $0xc0] sm:$0xff] }
  0x1f   : > { %1234 = vmatmul.mubr.msk.f32.vlgmr.msra.gmra.mxu0 %vm289_vm0, %v254_v6  ;;  %1258 = vmatmul.mubr.msk.f32.vlgmr.msra.gmra.mxu1 %vm289_vm0, %v270_v7  ;;  %v262_v22 = vld [vmem:[%s1527_s23 + $0x48] sm:$0xff]  ;;  %v263_v24 = vld [vmem:[%s1527_s23 + $0x50] sm:$0xff]  ;;  %v264_v26 = vld [vmem:[%s1527_s23 + $0x58] sm:$0xff]  ;;  %p1337_p0 = pneg %p1336_p13 }
  0x20   : > { %1236 = vmatprep.mubr.msk.f32.mxu0 %vm289_vm0, %v255_v8  ;;  %1260 = vmatprep.mubr.msk.f32.mxu1 %vm289_vm0, %v271_v9  ;;  %v278_v23 = vld [vmem:[%s1527_s23 + $0xc8] sm:$0xff]  ;;  %v279_v25 = vld [vmem:[%s1527_s23 + $0xd0] sm:$0xff]  ;;  %v280_v27 = vld [vmem:[%s1527_s23 + $0xd8] sm:$0xff] }
  0x21   : > { %v265_v28 = vld [vmem:[%s1527_s23 + $0x60] sm:$0xff]  ;;  %v266_v30 = vld [vmem:[%s1527_s23 + $0x68] sm:$0xff]  ;;  %v267_v32 = vld [vmem:[%s1527_s23 + $0x70] sm:$0xff] }
  0x22   : > { %v281_v29 = vld [vmem:[%s1527_s23 + $0xe0] sm:$0xff]  ;;  %v282_v31 = vld [vmem:[%s1527_s23 + $0xe8] sm:$0xff]  ;;  %v283_v33 = vld [vmem:[%s1527_s23 + $0xf0] sm:$0xff] }
  0x23   : > { %1237 = vmatmul.mubr.msk.f32.gmra.mxu0 %vm289_vm0, %v256_v10  ;;  %1261 = vmatmul.mubr.msk.f32.gmra.mxu1 %vm289_vm0, %v272_v11  ;;  %v268_v34 = vld [vmem:[%s1527_s23 + $0x78] sm:$0xff] }
  0x24   : > { %1239 = vmatprep.mubr.msk.f32.mxu0 %vm289_vm0, %v257_v12  ;;  %1263 = vmatprep.mubr.msk.f32.mxu1 %vm289_vm0, %v273_v13  ;;  %v284_v35 = vld [vmem:[%s1527_s23 + $0xf8] sm:$0xff]  ;;  %s1427_s23 = smov [#allocation2]  }
  0x25   : > { %s1338_s25 = sshll.u32 %s1427_s23, 4  ;;  %s1339_s25 = int_to_ptr.vmem [resolvable:$false] %s1338_s25 }
  0x26   : > { %s1340_s26 = scalar_lea.vmem %s1339_s25, 64  ;;  %p1341_p1 = scmp.lt.s32.totalorder %s1982_s12, %s1339_s25 }
  0x27   : > { %1240 = vmatmul.mubr.msk.f32.gmra.mxu0 %vm289_vm0, %v258_v14  ;;  %1264 = vmatmul.mubr.msk.f32.gmra.mxu1 %vm289_vm0, %v274_v15  ;;  %p1342_p2 = scmp.lt.s32.totalorder %s1340_s26, %s1334_s17 }
  0x28   : > { %1242 = vmatprep.mubr.msk.f32.mxu0 %vm289_vm0, %v259_v16  ;;  %1266 = vmatprep.mubr.msk.f32.mxu1 %vm289_vm0, %v275_v17 }
  0x29   : > { %p1343_p3 = por %p1342_p2, %p1341_p1 }
  0x2b   : > { %1243 = vmatmul.mubr.msk.f32.gmra.mxu0 %vm289_vm0, %v260_v18  ;;  %1267 = vmatmul.mubr.msk.f32.gmra.mxu1 %vm289_vm0, %v276_v19  ;;  %p1344_p4 = pnand %p1343_p3, %p1337_p0 }
  0x2c   : > { %1245 = vmatprep.mubr.msk.f32.mxu0 %vm289_vm0, %v261_v20  ;;  %1269 = vmatprep.mubr.msk.f32.mxu1 %vm289_vm0, %v277_v21 }
  0x2f   : > { %1246 = vmatmul.mubr.msk.f32.gmra.mxu0 %vm289_vm0, %v262_v22  ;;  %1270 = vmatmul.mubr.msk.f32.gmra.mxu1 %vm289_vm0, %v278_v23 }
  0x30   : > { %1248 = vmatprep.mubr.msk.f32.mxu0 %vm289_vm0, %v263_v24  ;;  %1272 = vmatprep.mubr.msk.f32.mxu1 %vm289_vm0, %v279_v25 }
  0x33   : > { %1249 = vmatmul.mubr.msk.f32.gmra.mxu0 %vm289_vm0, %v264_v26  ;;  %1273 = vmatmul.mubr.msk.f32.gmra.mxu1 %vm289_vm0, %v280_v27 }
  0x34   : > { %1251 = vmatprep.mubr.msk.f32.mxu0 %vm289_vm0, %v265_v28  ;;  %1275 = vmatprep.mubr.msk.f32.mxu1 %vm289_vm0, %v281_v29 }
  0x37   : > { %1252 = vmatmul.mubr.msk.f32.gmra.mxu0 %vm289_vm0, %v266_v30  ;;  %1276 = vmatmul.mubr.msk.f32.gmra.mxu1 %vm289_vm0, %v282_v31 }
  0x38   : > { %1254 = vmatprep.mubr.msk.f32.mxu0 %vm289_vm0, %v267_v32  ;;  %1278 = vmatprep.mubr.msk.f32.mxu1 %vm289_vm0, %v283_v33 }
  0x3b   : > { %1255 = vmatmul.mubr.msk.f32.gmra.mxu0 %vm289_vm0, %v268_v34  ;;  %1279 = vmatmul.mubr.msk.f32.gmra.mxu1 %vm289_vm0, %v284_v35 }
  0xdf   : > { %v1235_v36 = vpop.f32.mrf.mxu0  ;;  %v1259_v37 = vpop.f32.mrf.mxu1 }
  0xe0   : > { %v613_v45 = vmul.f32 2.0, %v1235_v36  ;;  %v629_v46 = vmul.f32 2.0, %v1259_v37 }
  0xe1   : > { %v452_v38 = vpop.f32.mrf.mxu0  ;;  %v532_v39 = vpop.f32.mrf.mxu1 }
  0xe2   : > { %v612_v40 = vmul.f32 2.0, %v452_v38  ;;  %v628_v41 = vmul.f32 2.0, %v532_v39  ;;  %v667_v53 = vsub.f32 %v1596_v44, %v629_v46  ;;  %v651_v54 = vsub.f32 %v1596_v44, %v613_v45 }
  0xe3   : > { %v1238_v42 = vpop.f32.mrf.mxu0  ;;  %v1262_v43 = vpop.f32.mrf.mxu1 }
  0xe4   : > { %v666_v47 = vsub.f32 %v1596_v44, %v628_v41  ;;  %v650_v48 = vsub.f32 %v1596_v44, %v612_v40  ;;  %v615_v57 = vmul.f32 2.0, %v1238_v42  ;;  %v631_v58 = vmul.f32 2.0, %v1262_v43 }
  0xe5   : > { %v462_v49 = vpop.f32.mrf.mxu0  ;;  %v542_v50 = vpop.f32.mrf.mxu1 }
  0xe6   : > { %714 = vxpose.xlu1.b32.start [1/16] %v666_v47, 128  ;;  %682 = vxpose.xlu0.b32.start [1/16] %v650_v48, 128  ;;  %v614_v51 = vmul.f32 2.0, %v462_v49  ;;  %v630_v52 = vmul.f32 2.0, %v542_v50  ;;  %v669_v1 = vsub.f32 %v1596_v44, %v631_v58  ;;  %v653_v2 = vsub.f32 %v1596_v44, %v615_v57 }
  0xe7   : > { %v1241_v55 = vpop.f32.mrf.mxu0  ;;  %v1265_v56 = vpop.f32.mrf.mxu1 }
  0xe8   : > { %v668_v59 = vsub.f32 %v1596_v44, %v630_v52  ;;  %v652_v60 = vsub.f32 %v1596_v44, %v614_v51  ;;  %v617_v5 = vmul.f32 2.0, %v1241_v55  ;;  %v633_v6 = vmul.f32 2.0, %v1265_v56 }
  0xe9   : > { %v472_v61 = vpop.f32.mrf.mxu0  ;;  %v552_v62 = vpop.f32.mrf.mxu1 }
  0xea   : > { %715 = vxpose.xlu1.b32.cont [2/16] %v667_v53, 128  ;;  %683 = vxpose.xlu0.b32.cont [2/16] %v651_v54, 128  ;;  %v616_v63 = vmul.f32 2.0, %v472_v61  ;;  %v632_v0 = vmul.f32 2.0, %v552_v62  ;;  %v671_v13 = vsub.f32 %v1596_v44, %v633_v6  ;;  %v655_v14 = vsub.f32 %v1596_v44, %v617_v5 }
  0xeb   : > { %v1244_v3 = vpop.f32.mrf.mxu0  ;;  %v1268_v4 = vpop.f32.mrf.mxu1 }
  0xec   : > { %v670_v7 = vsub.f32 %v1596_v44, %v632_v0  ;;  %v654_v8 = vsub.f32 %v1596_v44, %v616_v63  ;;  %v619_v17 = vmul.f32 2.0, %v1244_v3  ;;  %v635_v18 = vmul.f32 2.0, %v1268_v4 }
  0xed   : > { %v482_v9 = vpop.f32.mrf.mxu0  ;;  %v562_v10 = vpop.f32.mrf.mxu1 }
  0xee   : > { %716 = vxpose.xlu1.b32.cont [3/16] %v668_v59, 128  ;;  %684 = vxpose.xlu0.b32.cont [3/16] %v652_v60, 128  ;;  %v618_v11 = vmul.f32 2.0, %v482_v9  ;;  %v634_v12 = vmul.f32 2.0, %v562_v10  ;;  %v673_v25 = vsub.f32 %v1596_v44, %v635_v18  ;;  %v657_v26 = vsub.f32 %v1596_v44, %v619_v17 }
  0xef   : > { %v1247_v15 = vpop.f32.mrf.mxu0  ;;  %v1271_v16 = vpop.f32.mrf.mxu1 }
  0xf0   : > { %v672_v19 = vsub.f32 %v1596_v44, %v634_v12  ;;  %v656_v20 = vsub.f32 %v1596_v44, %v618_v11  ;;  %v621_v29 = vmul.f32 2.0, %v1247_v15  ;;  %v637_v30 = vmul.f32 2.0, %v1271_v16 }
  0xf1   : > { %v492_v21 = vpop.f32.mrf.mxu0  ;;  %v572_v22 = vpop.f32.mrf.mxu1 }
  0xf2   : > { %717 = vxpose.xlu1.b32.cont [4/16] %v669_v1, 128  ;;  %685 = vxpose.xlu0.b32.cont [4/16] %v653_v2, 128  ;;  %v620_v23 = vmul.f32 2.0, %v492_v21  ;;  %v636_v24 = vmul.f32 2.0, %v572_v22  ;;  %v675_v37 = vsub.f32 %v1596_v44, %v637_v30  ;;  %v659_v38 = vsub.f32 %v1596_v44, %v621_v29 }
  0xf3   : > { %v1250_v27 = vpop.f32.mrf.mxu0  ;;  %v1274_v28 = vpop.f32.mrf.mxu1 }
  0xf4   : > { %v674_v31 = vsub.f32 %v1596_v44, %v636_v24  ;;  %v658_v32 = vsub.f32 %v1596_v44, %v620_v23  ;;  %v623_v41 = vmul.f32 2.0, %v1250_v27  ;;  %v639_v42 = vmul.f32 2.0, %v1274_v28 }
  0xf5   : > { %v502_v33 = vpop.f32.mrf.mxu0  ;;  %v582_v34 = vpop.f32.mrf.mxu1 }
  0xf6   : > { %718 = vxpose.xlu1.b32.cont [5/16] %v670_v7, 128  ;;  %686 = vxpose.xlu0.b32.cont [5/16] %v654_v8, 128  ;;  %v622_v35 = vmul.f32 2.0, %v502_v33  ;;  %v638_v36 = vmul.f32 2.0, %v582_v34  ;;  %v677_v50 = vsub.f32 %v1596_v44, %v639_v42  ;;  %v661_v51 = vsub.f32 %v1596_v44, %v623_v41 }
  0xf7   : > { %v1253_v39 = vpop.f32.mrf.mxu0  ;;  %v1277_v40 = vpop.f32.mrf.mxu1 }
  0xf8   : > { %v676_v43 = vsub.f32 %v1596_v44, %v638_v36  ;;  %v660_v45 = vsub.f32 %v1596_v44, %v622_v35  ;;  %v625_v54 = vmul.f32 2.0, %v1253_v39  ;;  %v641_v55 = vmul.f32 2.0, %v1277_v40 }
  0xf9   : > { %v512_v46 = vpop.f32.mrf.mxu0  ;;  %v592_v47 = vpop.f32.mrf.mxu1 }
  0xfa   : > { %719 = vxpose.xlu1.b32.cont [6/16] %v671_v13, 128  ;;  %687 = vxpose.xlu0.b32.cont [6/16] %v655_v14, 128  ;;  %v624_v48 = vmul.f32 2.0, %v512_v46  ;;  %v640_v49 = vmul.f32 2.0, %v592_v47  ;;  %v679_v62 = vsub.f32 %v1596_v44, %v641_v55  ;;  %v663_v63 = vsub.f32 %v1596_v44, %v625_v54 }
  0xfb   : > { %v1256_v52 = vpop.f32.mrf.mxu0  ;;  %v1280_v53 = vpop.f32.mrf.mxu1 }
  0xfc   : > { %v678_v56 = vsub.f32 %v1596_v44, %v640_v49  ;;  %v662_v57 = vsub.f32 %v1596_v44, %v624_v48  ;;  %v627_v0 = vmul.f32 2.0, %v1256_v52  ;;  %v643_v1 = vmul.f32 2.0, %v1280_v53 }
  0xfd   : > { %v522_v58 = vpop.f32.mrf.mxu0  ;;  %v602_v59 = vpop.f32.mrf.mxu1 }
  0xfe   : > { %720 = vxpose.xlu1.b32.cont [7/16] %v672_v19, 128  ;;  %688 = vxpose.xlu0.b32.cont [7/16] %v656_v20, 128  ;;  %v626_v60 = vmul.f32 2.0, %v522_v58  ;;  %v642_v61 = vmul.f32 2.0, %v602_v59  ;;  %v681_v4 = vsub.f32 %v1596_v44, %v643_v1  ;;  %v665_v5 = vsub.f32 %v1596_v44, %v627_v0 }
 0x100   : > { %v680_v2 = vsub.f32 %v1596_v44, %v642_v61  ;;  %v664_v3 = vsub.f32 %v1596_v44, %v626_v60 }
 0x102   : > { %721 = vxpose.xlu1.b32.cont [8/16] %v673_v25, 128  ;;  %689 = vxpose.xlu0.b32.cont [8/16] %v657_v26, 128 }
 0x106   : > { %722 = vxpose.xlu1.b32.cont [9/16] %v674_v31, 128  ;;  %690 = vxpose.xlu0.b32.cont [9/16] %v658_v32, 128 }
 0x10a   : > { %723 = vxpose.xlu1.b32.cont [10/16] %v675_v37, 128  ;;  %691 = vxpose.xlu0.b32.cont [10/16] %v659_v38, 128 }
 0x10e   : > { %724 = vxpose.xlu1.b32.cont [11/16] %v676_v43, 128  ;;  %692 = vxpose.xlu0.b32.cont [11/16] %v660_v45, 128 }
 0x112   : > { %725 = vxpose.xlu1.b32.cont [12/16] %v677_v50, 128  ;;  %693 = vxpose.xlu0.b32.cont [12/16] %v661_v51, 128 }
 0x116   : > { %726 = vxpose.xlu1.b32.cont [13/16] %v678_v56, 128  ;;  %694 = vxpose.xlu0.b32.cont [13/16] %v662_v57, 128 }
 0x11a   : > { %727 = vxpose.xlu1.b32.cont [14/16] %v679_v62, 128  ;;  %695 = vxpose.xlu0.b32.cont [14/16] %v663_v63, 128 }
 0x11e   : > { %728 = vxpose.xlu1.b32.cont [15/16] %v680_v2, 128  ;;  %696 = vxpose.xlu0.b32.cont [15/16] %v664_v3, 128 }
 0x122   : > { %729 = vxpose.xlu1.b32.end [16/16] %v681_v4, 128  ;;  %697 = vxpose.xlu0.b32.end [16/16] %v665_v5, 128 }
 0x162   : > { %v1630_v6 = vpop.trf.xlu1  ;;  %v1632_v7 = vpop.trf.xlu0 }
 0x166   : > { %v1634_v8 = vpop.trf.xlu1  ;;  %v1636_v9 = vpop.trf.xlu0 }
 0x16a   : > { %v1638_v10 = vpop.trf.xlu1  ;;  %v1640_v11 = vpop.trf.xlu0 }
 0x16b   : > { %v767_v31 = vmin.f32 %v1630_v6, %v1638_v10  ;;  %v746_v32 = vmin.f32 %v1632_v7, %v1640_v11 }
 0x16e   : > { %v1642_v12 = vpop.trf.xlu1  ;;  %v1644_v13 = vpop.trf.xlu0 }
 0x16f   : > { %v768_v33 = vmin.f32 %v1634_v8, %v1642_v12  ;;  %v747_v34 = vmin.f32 %v1636_v9, %v1644_v13 }
 0x172   : > { %v1646_v14 = vpop.trf.xlu1  ;;  %v1648_v44 = vpop.trf.xlu0 }
 0x173   : > { %v769_v35 = vmin.f32 %v767_v31, %v1646_v14  ;;  %v748_v36 = vmin.f32 %v746_v32, %v1648_v44 }
 0x176   : > { %v1650_v15 = vpop.trf.xlu1  ;;  %v1652_v16 = vpop.trf.xlu0 }
 0x177   : > { %v770_v37 = vmin.f32 %v768_v33, %v1650_v15  ;;  %v749_v38 = vmin.f32 %v747_v34, %v1652_v16  ;;  %v788_v33 = vlaneseq }
 0x17a   : > { %v1654_v17 = vpop.trf.xlu1  ;;  %v1656_v18 = vpop.trf.xlu0 }
 0x17b   : > { %v771_v41 = vmin.f32 %v769_v35, %v1654_v17  ;;  %v750_v42 = vmin.f32 %v748_v36, %v1656_v18 }
 0x17e   : > { %v1658_v19 = vpop.trf.xlu1  ;;  %v1660_v20 = vpop.trf.xlu0 }
 0x17f   : > { %v772_v43 = vmin.f32 %v770_v37, %v1658_v19  ;;  %v751_v45 = vmin.f32 %v749_v38, %v1660_v20  ;;  %v1729_v37 = vshrl.u32 %v788_v33, 7 }
 0x182   : > { %v1662_v21 = vpop.trf.xlu1  ;;  %v1664_v22 = vpop.trf.xlu0 }
 0x183   : > { %v773_v46 = vmin.f32 %v771_v41, %v1662_v21  ;;  %v752_v47 = vmin.f32 %v750_v42, %v1664_v22  ;;  %v1426_v41 = vmov 1966171168  }
 0x184   : > { %v965_v42 = vunpack.c.l.s4 %v1426_v41 }
 0x186   : > { %v1666_v23 = vpop.trf.xlu1  ;;  %v1668_v24 = vpop.trf.xlu0 }
 0x187   : > { %v774_v48 = vmin.f32 %v772_v43, %v1666_v23  ;;  %v753_v49 = vmin.f32 %v751_v45, %v1668_v24  ;;  %v1732_v45 = vadd.s32 8, %v1729_v37 }
 0x18a   : > { %v1670_v25 = vpop.trf.xlu1  ;;  %v1672_v26 = vpop.trf.xlu0 }
 0x18b   : > { %v775_v52 = vmin.f32 %v773_v46, %v1670_v25  ;;  %v754_v53 = vmin.f32 %v752_v47, %v1672_v26  ;;  %v1735_v46 = vadd.s32 16, %v1729_v37  ;;  %v1738_v47 = vadd.s32 24, %v1729_v37 }
 0x18e   : > { %v1674_v27 = vpop.trf.xlu1  ;;  %v1676_v28 = vpop.trf.xlu0 }
 0x18f   : > { %v776_v54 = vmin.f32 %v774_v48, %v1674_v27  ;;  %v755_v55 = vmin.f32 %v753_v49, %v1676_v28  ;;  %v1741_v48 = vadd.s32 32, %v1729_v37  ;;  %v1747_v49 = vadd.s32 40, %v1729_v37 }
 0x192   : > { %v1678_v29 = vpop.trf.xlu1  ;;  %v1680_v30 = vpop.trf.xlu0 }
 0x193   : > { %v777_v56 = vmin.f32 %v775_v52, %v1678_v29  ;;  %v756_v57 = vmin.f32 %v754_v53, %v1680_v30  ;;  %v1750_v52 = vadd.s32 48, %v1729_v37  ;;  %v1753_v53 = vadd.s32 56, %v1729_v37 }
 0x196   : > { %v1694_v39 = vpop.trf.xlu1  ;;  %v1696_v40 = vpop.trf.xlu0 }
 0x197   : > { %v778_v58 = vmin.f32 %v776_v54, %v1694_v39  ;;  %v757_v59 = vmin.f32 %v755_v55, %v1696_v40 }
 0x19a   : > { %v1706_v50 = vpop.trf.xlu1  ;;  %v1708_v51 = vpop.trf.xlu0 }
 0x19b   : > { %v779_v62 = vmin.f32 %v777_v56, %v1706_v50  ;;  %v758_v63 = vmin.f32 %v756_v57, %v1708_v51  ;;  %v951_v56 = vsub.s32 0, %v1729_v37  ;;  %v955_v57 = vsub.s32 1, %v1729_v37 }
 0x19e   : > { %v1718_v60 = vpop.trf.xlu1  ;;  %v1720_v61 = vpop.trf.xlu0 }
 0x19f   : > { %v780_v0 = vmin.f32 %v778_v58, %v1718_v60  ;;  %v759_v1 = vmin.f32 %v757_v59, %v1720_v61  ;;  %v966_v58 = vunpack.c.0.s8 %v965_v42  ;;  %v1760_v59 = vadd.s32 64, %v1729_v37 }
 0x1a1   : > { %v781_v2 = vmin.f32 %v779_v62, %v780_v0  ;;  %v760_v3 = vmin.f32 %v758_v63, %v759_v1  ;;  %v1763_v62 = vadd.s32 72, %v1729_v37  ;;  %v1766_v63 = vadd.s32 80, %v1729_v37  ;;  %v947_v1 = vld [vmem:[%s252_s7] sm:$0x3] }
 0x1a2   : > { %v1769_v0 = vadd.s32 88, %v1729_v37 }
 0x1a3   : > { %v782_v4 = vrot.slane %v781_v2, 4  ;;  %v761_v5 = vrot.slane %v760_v3, 4 }
 0x1a5   : > { %v783_v31 = vmin.f32 %v781_v2, %v782_v4  ;;  %v762_v32 = vmin.f32 %v760_v3, %v761_v5  ;;  %v1772_v2 = vadd.s32 96, %v1729_v37  ;;  %v1775_v3 = vadd.s32 104, %v1729_v37 }
 0x1a6   : > { %v1778_v4 = vadd.s32 112, %v1729_v37  ;;  %v1781_v5 = vadd.s32 120, %v1729_v37 }
 0x1a7   : > { %v784_v34 = vrot.slane %v783_v31, 2  ;;  %v763_v35 = vrot.slane %v762_v32, 2 }
 0x1a9   : > { %v785_v36 = vmin.f32 %v783_v31, %v784_v34  ;;  %v764_v38 = vmin.f32 %v762_v32, %v763_v35  ;;  %v1793_v32 = vrot.slane %v947_v1, %v951_v56  ;;  %v1795_v34 = vrot.slane %v947_v1, %v955_v57 }
 0x1aa   : > { %v1798_v35 = vsub.s32 %v966_v58, %v1729_v37 }
 0x1ab   : > { %v786_v43 = vrot.slane %v785_v36, 1  ;;  %v765_v55 = vrot.slane %v764_v38, 1 }
 0x1ad   : > { %v1755_v54 = vmin.f32 %v785_v36, %v786_v43  ;;  %v1791_v31 = vmin.f32 %v764_v38, %v765_v55 }
 0x1af   : > { %vm806_vm1 = vcmp.eq.f32.partialorder %v1630_v6, %v1755_v54  ;;  %vm808_vm2 = vcmp.eq.f32.partialorder %v1634_v8, %v1755_v54  ;;  %vm810_vm3 = vcmp.eq.f32.partialorder %v1638_v10, %v1755_v54  ;;  %vm812_vm4 = vcmp.eq.f32.partialorder %v1642_v12, %v1755_v54 }
 0x1b0   : > { %vm814_vm5 = vcmp.eq.f32.partialorder %v1646_v14, %v1755_v54  ;;  %vm816_vm6 = vcmp.eq.f32.partialorder %v1650_v15, %v1755_v54  ;;  %vm818_vm7 = vcmp.eq.f32.partialorder %v1654_v17, %v1755_v54  ;;  %vm820_vm8 = vcmp.eq.f32.partialorder %v1658_v19, %v1755_v54 }
 0x1b1   : > { %v838_v6 = vsel %vm806_vm1, %v1729_v37, 128  ;;  %v840_v8 = vsel %vm808_vm2, %v1732_v45, 128  ;;  %v842_v10 = vsel %vm810_vm3, %v1735_v46, 128  ;;  %v844_v12 = vsel %vm812_vm4, %v1738_v47, 128 }
 0x1b2   : > { %vm822_vm9 = vcmp.eq.f32.partialorder %v1662_v21, %v1755_v54  ;;  %vm824_vm10 = vcmp.eq.f32.partialorder %v1666_v23, %v1755_v54  ;;  %vm826_vm11 = vcmp.eq.f32.partialorder %v1670_v25, %v1755_v54  ;;  %vm828_vm12 = vcmp.eq.f32.partialorder %v1674_v27, %v1755_v54 }
 0x1b3   : > { %vm830_vm13 = vcmp.eq.f32.partialorder %v1678_v29, %v1755_v54  ;;  %vm832_vm14 = vcmp.eq.f32.partialorder %v1694_v39, %v1755_v54  ;;  %vm834_vm15 = vcmp.eq.f32.partialorder %v1706_v50, %v1755_v54  ;;  %vm836_vm0 = vcmp.eq.f32.partialorder %v1718_v60, %v1755_v54 }
 0x1b4   : > { %v846_v36 = vsel %vm814_vm5, %v1741_v48, 128  ;;  %v848_v38 = vsel %vm816_vm6, %v1747_v49, 128  ;;  %vm908_vm1 = vcmp.lt.s32.totalorder %v838_v6, %v842_v10  ;;  %vm910_vm2 = vcmp.lt.s32.totalorder %v840_v8, %v844_v12 }
 0x1b5   : > { %v850_v41 = vsel %vm818_vm7, %v1750_v52, 128  ;;  %v852_v42 = vsel %vm820_vm8, %v1753_v53, 128  ;;  %v909_v43 = vsel %vm908_vm1, %v838_v6, %v842_v10  ;;  %v911_v14 = vsel %vm910_vm2, %v840_v8, %v844_v12 }
 0x1b6   : > { %v854_v15 = vsel %vm822_vm9, %v1760_v59, 128  ;;  %v856_v55 = vsel %vm824_vm10, %v1763_v62, 128  ;;  %vm912_vm3 = vcmp.lt.s32.totalorder %v909_v43, %v846_v36  ;;  %vm914_vm4 = vcmp.lt.s32.totalorder %v911_v14, %v848_v38 }
 0x1b7   : > { %v858_v17 = vsel %vm826_vm11, %v1766_v63, 128  ;;  %v860_v19 = vsel %vm828_vm12, %v1769_v0, 128  ;;  %v913_v56 = vsel %vm912_vm3, %v909_v43, %v846_v36  ;;  %v915_v21 = vsel %vm914_vm4, %v911_v14, %v848_v38 }
 0x1b8   : > { %v862_v23 = vsel %vm830_vm13, %v1772_v2, 128  ;;  %v864_v57 = vsel %vm832_vm14, %v1775_v3, 128  ;;  %vm916_vm5 = vcmp.lt.s32.totalorder %v913_v56, %v850_v41  ;;  %vm918_vm6 = vcmp.lt.s32.totalorder %v915_v21, %v852_v42 }
 0x1b9   : > { %v866_v25 = vsel %vm834_vm15, %v1778_v4, 128  ;;  %v868_v27 = vsel %vm836_vm0, %v1781_v5, 128  ;;  %v917_v58 = vsel %vm916_vm5, %v913_v56, %v850_v41  ;;  %v919_v29 = vsel %vm918_vm6, %v915_v21, %v852_v42 }
 0x1ba   : > { %vm920_vm7 = vcmp.lt.s32.totalorder %v917_v58, %v854_v15  ;;  %vm922_vm8 = vcmp.lt.s32.totalorder %v919_v29, %v856_v55  ;;  %vm805_vm9 = vcmp.eq.f32.partialorder %v1632_v7, %v1791_v31  ;;  %vm807_vm10 = vcmp.eq.f32.partialorder %v1636_v9, %v1791_v31 }
 0x1bb   : > { %v921_v39 = vsel %vm920_vm7, %v917_v58, %v854_v15  ;;  %v923_v1 = vsel %vm922_vm8, %v919_v29, %v856_v55  ;;  %vm809_vm11 = vcmp.eq.f32.partialorder %v1640_v11, %v1791_v31  ;;  %vm811_vm12 = vcmp.eq.f32.partialorder %v1644_v13, %v1791_v31 }
 0x1bc   : > { %vm924_vm13 = vcmp.lt.s32.totalorder %v921_v39, %v858_v17  ;;  %vm926_vm14 = vcmp.lt.s32.totalorder %v923_v1, %v860_v19  ;;  %vm813_vm15 = vcmp.eq.f32.partialorder %v1648_v44, %v1791_v31  ;;  %vm815_vm0 = vcmp.eq.f32.partialorder %v1652_v16, %v1791_v31 }
 0x1bd   : > { %v925_v50 = vsel %vm924_vm13, %v921_v39, %v858_v17  ;;  %v927_v60 = vsel %vm926_vm14, %v923_v1, %v860_v19  ;;  %vm817_vm1 = vcmp.eq.f32.partialorder %v1656_v18, %v1791_v31  ;;  %vm819_vm2 = vcmp.eq.f32.partialorder %v1660_v20, %v1791_v31 }
 0x1be   : > { %vm928_vm3 = vcmp.lt.s32.totalorder %v925_v50, %v862_v23  ;;  %vm930_vm4 = vcmp.lt.s32.totalorder %v927_v60, %v864_v57  ;;  %vm821_vm5 = vcmp.eq.f32.partialorder %v1664_v22, %v1791_v31  ;;  %vm823_vm6 = vcmp.eq.f32.partialorder %v1668_v24, %v1791_v31 }
 0x1bf   : > { %v929_v6 = vsel %vm928_vm3, %v925_v50, %v862_v23  ;;  %v931_v8 = vsel %vm930_vm4, %v927_v60, %v864_v57  ;;  %v837_v10 = vsel %vm805_vm9, %v1729_v37, 128  ;;  %v839_v12 = vsel %vm807_vm10, %v1732_v45, 128 }
 0x1c0   : > { %vm932_vm7 = vcmp.lt.s32.totalorder %v929_v6, %v866_v25  ;;  %vm934_vm8 = vcmp.lt.s32.totalorder %v931_v8, %v868_v27  ;;  %v841_v36 = vsel %vm809_vm11, %v1735_v46, 128  ;;  %v843_v38 = vsel %vm811_vm12, %v1738_v47, 128 }
 0x1c1   : > { %v933_v41 = vsel %vm932_vm7, %v929_v6, %v866_v25  ;;  %v935_v7 = vsel %vm934_vm8, %v931_v8, %v868_v27  ;;  %vm825_vm9 = vcmp.eq.f32.partialorder %v1672_v26, %v1791_v31  ;;  %vm827_vm10 = vcmp.eq.f32.partialorder %v1676_v28, %v1791_v31 }
 0x1c2   : > { %vm936_vm13 = vcmp.lt.s32.totalorder %v933_v41, %v935_v7  ;;  %vm829_vm11 = vcmp.eq.f32.partialorder %v1680_v30, %v1791_v31  ;;  %vm831_vm14 = vcmp.eq.f32.partialorder %v1696_v40, %v1791_v31  ;;  %v845_v9 = vsel %vm813_vm15, %v1741_v48, 128 }
 0x1c3   : > { %vm1928_vm12 = vcmp.lt.s32.totalorder %v788_v33, 256  ;;  %v937_v13 = vsel %vm936_vm13, %v933_v41, %v935_v7  ;;  %vm833_vm3 = vcmp.eq.f32.partialorder %v1708_v51, %v1791_v31  ;;  %v847_v37 = vsel %vm815_vm0, %v1747_v49, 128 }
 0x1c4   : > { %vm869_vm4 = vcmp.lt.s32.totalorder %v837_v10, %v841_v36  ;;  %vm871_vm7 = vcmp.lt.s32.totalorder %v839_v12, %v843_v38  ;;  %v938_v45 = vrot.slane %v937_v13, 4  ;;  %v959_v33 = vadd.f32 %v1793_v32, %v1791_v31 }
 0x1c5   : > { %v870_v46 = vsel %vm869_vm4, %v837_v10, %v841_v36  ;;  %v872_v44 = vsel %vm871_vm7, %v839_v12, %v843_v38  ;;  %v849_v47 = vsel %vm817_vm1, %v1750_v52, 128  ;;  %v960_v16 = vadd.f32 %v1795_v34, %v1755_v54 }
 0x1c6   : > { %vm873_vm15 = vcmp.lt.s32.totalorder %v870_v46, %v845_v9  ;;  %vm875_vm8 = vcmp.lt.s32.totalorder %v872_v44, %v847_v37  ;;  %vm939_vm0 = vcmp.lt.s32.totalorder %v937_v13, %v938_v45  ;;  %v851_v48 = vsel %vm819_vm2, %v1753_v53, 128 }
 0x1c7   : > { %v874_v49 = vsel %vm873_vm15, %v870_v46, %v845_v9  ;;  %v876_v42 = vsel %vm875_vm8, %v872_v44, %v847_v37  ;;  %v853_v18 = vsel %vm821_vm5, %v1760_v59, 128  ;;  %v963_v52 = vcombine.low %v959_v33, %v960_v16 }
 0x1c8   : > { %vm877_vm1 = vcmp.lt.s32.totalorder %v874_v49, %v849_v47  ;;  %vm879_vm13 = vcmp.lt.s32.totalorder %v876_v42, %v851_v48  ;;  %v1955_v32 = vsel %vm939_vm0, %v937_v13, %v938_v45  ;;  %v855_v54 = vsel %vm823_vm6, %v1763_v62, 128 }
 0x1c9   : > { %v878_v34 = vsel %vm877_vm1, %v874_v49, %v849_v47  ;;  %v880_v20 = vsel %vm879_vm13, %v876_v42, %v851_v48  ;;  %vm835_vm2 = vcmp.eq.f32.partialorder %v1720_v61, %v1791_v31  ;;  %v970_v22 = vrot.slane %v963_v52, %v1798_v35 }
 0x1ca   : > { %vm881_vm5 = vcmp.lt.s32.totalorder %v878_v34, %v853_v18  ;;  %vm883_vm4 = vcmp.lt.s32.totalorder %v880_v20, %v855_v54  ;;  %v857_v53 = vsel %vm825_vm9, %v1766_v63, 128  ;;  %v859_v24 = vsel %vm827_vm10, %v1769_v0, 128 }
 0x1cb   : > { %v882_v59 = vsel %vm881_vm5, %v878_v34, %v853_v18  ;;  %v884_v62 = vsel %vm883_vm4, %v880_v20, %v855_v54  ;;  %v941_v43 = vrot.slane %v1955_v32, 2  ;;  %v977_v14 = vrot.slane %v970_v22, %v1798_v35 }
 0x1cc   : > { %vm885_vm6 = vcmp.lt.s32.totalorder %v882_v59, %v857_v53  ;;  %vm887_vm7 = vcmp.lt.s32.totalorder %v884_v62, %v859_v24  ;;  %v861_v26 = vsel %vm829_vm11, %v1772_v2, 128  ;;  %v863_v28 = vsel %vm831_vm14, %v1775_v3, 128 }
 0x1cd   : > { %v886_v63 = vsel %vm885_vm6, %v882_v59, %v857_v53  ;;  %v888_v0 = vsel %vm887_vm7, %v884_v62, %v859_v24  ;;  %983 = vst.msk [vmem:[%s235_s11] sm:$0x3] %vm1928_vm12, %v977_v14  ;;  %v865_v30 = vsel %vm833_vm3, %v1778_v4, 128  ;;  %v867_v2 = vsel %vm835_vm2, %v1781_v5, 128 }
 0x1ce   : > { %vm889_vm9 = vcmp.lt.s32.totalorder %v886_v63, %v861_v26  ;;  %vm891_vm10 = vcmp.lt.s32.totalorder %v888_v0, %v863_v28 }
 0x1cf   : > { %v890_v40 = vsel %vm889_vm9, %v886_v63, %v861_v26  ;;  %v892_v3 = vsel %vm891_vm10, %v888_v0, %v863_v28 }
 0x1d0   : > { %1347 = shalt.err (!%p1344_p4)
}
 0x1d1   : > { %s1348_s30 = scalar_lea.hbm %s1980_s15, 32  ;;  %s1352_s7 = scalar_lea.hbm %s2069_s4, 64 }
 0x1d2   : > { %p1349_p7 = scmp.ne.s32.totalorder %s1980_s15, %s1348_s30  ;;  %p1353_p10 = scmp.lt.s32.totalorder %s1980_s15, %s2069_s4 }
 0x1d3   : > { %p1354_p11 = scmp.lt.s32.totalorder %s1352_s7, %s1348_s30 }
 0x1d4   : > { %p1350_p8 = pnand %p1349_p7, %p1497_p5 }
 0x1d5   : > { %p1355_p12 = por %p1354_p11, %p1353_p10 }
 0x1d6   : > { %p1351_p9 = pneg %p1350_p8 }
 0x1d8   : > { %p1356_p13 = pnand %p1355_p12, %p1351_p9 }
 0x1da   : > { %1359 = shalt.err (!%p1356_p13)
}
 0x1db   : > { %1289 = dma.vmem_to_hbm [thread:$0]  (%p1497_p5), %s1982_s12, 32, %s1980_s15, %s1001_s16   ;;  %vm942_vm11 = vcmp.lt.s32.totalorder %v1955_v32, %v941_v43  ;;  %vm893_vm14 = vcmp.lt.s32.totalorder %v890_v40, %v865_v30  ;;  %vm895_vm3 = vcmp.lt.s32.totalorder %v892_v3, %v867_v2 }
 0x1dc   : > { %v894_v51 = vsel %vm893_vm14, %v890_v40, %v865_v30  ;;  %v896_v61 = vsel %vm895_vm3, %v892_v3, %v867_v2  ;;  %v943_v4 = vsel %vm942_vm11, %v1955_v32, %v941_v43  ;;  %s242_s12 = scalar_lea.vmem [#allocation4], %s1141_s10  ;;  %s1032_s17 = scalar_lea.hbm %s2070_s5, %s1514_s9 }
 0x1dd   : > { %vm897_vm15 = vcmp.lt.s32.totalorder %v894_v51, %v896_v61  ;;  %v944_v15 = vrot.slane %v943_v4, 1  ;;  %s1034_s14 = sshll.u32 %s242_s12, 4  ;;  %s1006_s23 = scalar_lea.sflag [#allocation5], %s1917_s8  ;;  %s1035_s14 = int_to_ptr.vmem [resolvable:$true] %s1034_s14 }
 0x1de   : > { %v898_v5 = vsel %vm897_vm15, %v894_v51, %v896_v61  ;;  %s1360_s25 = scalar_lea.vmem %s1035_s14, 32  ;;  %s1428_s10 = smov [#allocation4]  }
 0x1df   : > { %v899_v31 = vrot.slane %v898_v5, 4  ;;  %vm945_vm0 = vcmp.lt.s32.totalorder %v943_v4, %v944_v15  ;;  %p1361_p0 = scmp.ne.s32.totalorder %s1035_s14, %s1360_s25  ;;  %s1364_s26 = sshll.u32 %s1428_s10, 4  ;;  %s1365_s26 = int_to_ptr.vmem [resolvable:$false] %s1364_s26 }
 0x1e0   : > { %v946_v21 = vsel %vm945_vm0, %v943_v4, %v944_v15  ;;  %s1366_s30 = scalar_lea.vmem %s1365_s26, 64  ;;  %p1367_p3 = scmp.lt.s32.totalorder %s1035_s14, %s1365_s26 }
 0x1e1   : > { %vm900_vm8 = vcmp.lt.s32.totalorder %v898_v5, %v899_v31  ;;  %p1362_p1 = pnand %p1361_p0, %p1497_p5  ;;  %p1368_p4 = scmp.lt.s32.totalorder %s1366_s30, %s1360_s25 }
 0x1e2   : > { %v901_v55 = vsel %vm900_vm8, %v898_v5, %v899_v31 }
 0x1e3   : > { %v902_v17 = vrot.slane %v901_v55, 2  ;;  %p1363_p2 = pneg %p1362_p1  ;;  %p1369_p7 = por %p1368_p4, %p1367_p3 }
 0x1e5   : > { %vm903_vm1 = vcmp.lt.s32.totalorder %v901_v55, %v902_v17  ;;  %p1370_p8 = pnand %p1369_p7, %p1363_p2 }
 0x1e6   : > { %v904_v19 = vsel %vm903_vm1, %v901_v55, %v902_v17 }
 0x1e7   : > { %v905_v56 = vrot.slane %v904_v19, 1 }
 0x1e9   : > { %vm906_vm13 = vcmp.lt.s32.totalorder %v904_v19, %v905_v56 }
 0x1ea   : > { %v907_v23 = vsel %vm906_vm13, %v904_v19, %v905_v56 }
 0x1eb   : > { %v984_v57 = vcombine.low %v907_v23, %v946_v21 }
 0x1ed   : > { %v991_v25 = vrot.slane %v984_v57, %v1798_v35 }
 0x1ef   : > { %v998_v27 = vrot.slane %v991_v25, %v1798_v35 }
 0x1f1   : > { %999 = vst.msk [vmem:[%s242_s12] sm:$0x3] %vm1928_vm12, %v998_v27 }
 0x1f2   : > { %1373 = shalt.err (!%p1370_p8)
}
 0x1f3   : > { %s1374_s9 = scalar_lea.hbm %s1032_s17, 32  ;;  %s1378_s6 = scalar_lea.hbm %s2070_s5, 64 }
 0x1f4   : > { %p1375_p9 = scmp.ne.s32.totalorder %s1032_s17, %s1374_s9  ;;  %p1379_p12 = scmp.lt.s32.totalorder %s1032_s17, %s2070_s5 }
 0x1f5   : > { %p1380_p13 = scmp.lt.s32.totalorder %s1378_s6, %s1374_s9 }
 0x1f6   : > { %p1376_p10 = pnand %p1375_p9, %p1497_p5 }
 0x1f7   : > { %p1381_p0 = por %p1380_p13, %p1379_p12 }
 0x1f8   : > { %p1377_p11 = pneg %p1376_p10 }
 0x1fa   : > { %p1382_p1 = pnand %p1381_p0, %p1377_p11 }
 0x1fc   : > { %1385 = shalt.err (!%p1382_p1)
}
 0x1fd   : > { %1290 = dma.vmem_to_hbm [thread:$0]  (%p1497_p5), %s1035_s14, 32, %s1032_s17, %s1006_s23  }
 0x1fe PF: > { %p1300_p2 = scmp.ge.s32.totalorder %s1424_s21, 2  ;;  %s1046_s13 = sand.u32 1, %s1412_s18  }
 0x1ff   : > { %s1047_s12 = scalar_lea.sflag [#allocation3], %s1046_s13 }
 0x200   : > { %p1294_p3 = pnand %p1300_p2, %p1501_p6 }
 0x202   : > { %p1295_p4 = pneg %p1294_p3 }
 0x204   : > { %1403 = dma.done.wait (%p1295_p4), %s1047_s12, 32  }
 0x205   : > { %1405 = vsyncadd (%p1295_p4), %s1047_s12, 4294967264  ;;  %s1056_s15 = scalar_lea.sflag [#allocation5], %s1046_s13 }
 0x206   : > { %1407 = dma.done.wait (%p1295_p4), %s1056_s15, 32  }
 0x207   : > { %1409 = vsyncadd (%p1295_p4), %s1056_s15, 4294967264  ;;  %p19_p5 = scmp.ge.s32.totalorder %s1484_s24, 4   ;;  %s2075_s18 = smov %s1416_s19 }
 0x208   : > { %s2076_s19 = smov %s1420_s20  ;;  %s2077_s20 = smov %s1495_s27 }
 0x209   : > { %s2078_s21 = smov %s1484_s24  ;;  %21 = sbr.rel (!%p19_p5) target bundleno = 5 (0x5), region = 91 }
 0x20e   :  { %1061 = vsyncpa [#allocation3], 1 }
 0x20f   :  { %1063 = vsyncpa [#allocation3 + $0x1], 1 }
 0x210   :  { %1064 = vsyncpa [#allocation5], 1 }
 0x211   :  { %1066 = vsyncpa [#allocation5 + $0x1], 1 }

</bundles_post_ra>
